<compile_context>
chip_gen: v6e
topology: v6e:2x2x1
jax: 0.10.0
libtpu: 0.0.40
codegen_flags: <defaults>
</compile_context>

<pallas_src>
import functools

import jax
import jax.numpy as jnp
from jax.experimental import pallas as pl
from jax.experimental.pallas import tpu as pltpu

NEG_SLOPE = 0.01
BN_EPS = 1e-5


def _leaky_relu(v):
    return jnp.where(v >= 0, v, NEG_SLOPE * v)


def _round_up(v, m):
    return ((v + m - 1) // m) * m


# ---------------------------------------------------------------------------
# Pass 1: training-mode BN batch statistics of the (bias-less) 1x1 downsample.
# ---------------------------------------------------------------------------
def bn_stats_kernel(x_ref, wd_ref, sum_ref, sq_ref):
    """Per-image sum / sum-of-squares of d = x @ wd over all padded rows.

    x_ref : (n_img, cin_p) padded-domain rows of one image (ring rows are zero,
            so they contribute nothing to either sum).
    """
    x = x_ref[...]
    d = jnp.dot(x, wd_ref[...], preferred_element_type=jnp.float32)   # (n_img, clane)
    s = jnp.sum(d, axis=0, keepdims=True)                             # (1, clane)
    ss = jnp.sum(d * d, axis=0, keepdims=True)
    sum_ref[...] = jnp.broadcast_to(s, sum_ref.shape)
    sq_ref[...] = jnp.broadcast_to(ss, sq_ref.shape)


# ---------------------------------------------------------------------------
# Pass 2: conv1 -> LeakyReLU -> conv2 (+ BN-scaled downsample) -> shift -> LeakyReLU.
# ---------------------------------------------------------------------------
def residual_block_kernel(x_ref, w1_ref, b1_ref, w2e_ref, shift_ref, o_ref, *,
                          H, W, Wp, pad, n_img, n_ext):
    """One image, row-flattened padded layout: q = i*Wp + j over an (H+2, Wp) grid.

    x_ref     : (n_img + 4*pad, cin_p)   image rows + zero guard rows
    w1_ref    : (9*cin_p, cmid)          conv1 taps stacked along K ((kh,kw) row-major)
    b1_ref    : (1, cmid)
    w2e_ref   : (9*cmid + cin_p, clane)  conv2 taps + BN-scaled 1x1 downsample rows
    shift_ref : (1, clane)               beta + b2 - mean*scale
    o_ref     : (n_img, clane)           per padded-domain row (ring rows = junk)
    """
    x = x_ref[...]                                   # single hoisted load
    w1 = w1_ref[...]
    b1 = b1_ref[...]
    w2e = w2e_ref[...]
    shift = shift_ref[...]

    cin_p = x.shape[-1]
    cmid = w1.shape[-1]
    base = pad - Wp                                  # multiple of 8

    # ---- conv1: single K=9*cin_p matmul on an im2col built from aligned slices.
    # kw = -1/0/+1 shifts are materialized once (the only sublane-misaligned
    # slices); every kh shift is a multiple of Wp (a multiple of 8).
    span1 = n_ext + 2 * Wp
    x3 = jnp.concatenate([x[base - 1: base - 1 + span1],
                          x[base:     base + span1],
                          x[base + 1: base + 1 + span1]], axis=1)    # (span1, 3*cin_p)
    X1 = jnp.concatenate([x3[0:n_ext],
                          x3[Wp: Wp + n_ext],
                          x3[2 * Wp: 2 * Wp + n_ext]], axis=1)       # (n_ext, 9*cin_p)
    c1 = jnp.dot(X1, w1, preferred_element_type=jnp.float32)         # (n_ext, cmid)

    # Interior mask from an in-kernel iota (row in [1,H], col in [1,W]); zeroes the
    # padding ring + guard rows so conv2 sees a properly zero-padded input.
    # Float floor-div is exact here: margin 0.5/Wp >> f32 rounding error of the product.
    q = jax.lax.broadcasted_iota(jnp.int32, (n_ext, 1), 0).astype(jnp.float32) \
        + float(2 * Wp - pad)                        # padded-row index + 2*Wp (>= 0)
    row = jnp.floor((q + 0.5) * (1.0 / Wp)) - 2.0
    col = q - float(Wp) * (row + 2.0)
    interior = ((row >= 1.0) & (row <= float(H)) & (col >= 1.0) & (col <= float(W)))
    y = jnp.where(interior, _leaky_relu(c1 + b1), 0.0)               # (n_ext, cmid)

    # ---- conv2 + downsample fused in one K = 9*cmid + cin_p matmul.  The BN scale
    # is pre-folded into the downsample rows of w2e; BN shift + conv2 bias are in
    # `shift`, so the epilogue is one add + LeakyReLU.
    span2 = n_img + 2 * Wp
    y3 = jnp.concatenate([y[base - 1: base - 1 + span2],
                          y[base:     base + span2],
                          y[base + 1: base + 1 + span2]], axis=1)    # (span2, 3*cmid)
    xc = x[2 * pad: 2 * pad + n_img]                                 # aligned center rows
    X2 = jnp.concatenate([y3[0:n_img],
                          y3[Wp: Wp + n_img],
                          y3[2 * Wp: 2 * Wp + n_img],
                          xc], axis=1)                               # (n_img, 9*cmid + cin_p)
    out = jnp.dot(X2, w2e, preferred_element_type=jnp.float32) + shift
    o_ref[...] = _leaky_relu(out)


def residual_block_forward(x_nchw, params, *, stride=1):
    """Pallas ResidualBlock forward.  x_nchw: (N, Cin, H, W) float32."""
    assert stride == 1, "stride != 1 not implemented"
    x_nchw = x_nchw.astype(jnp.float32)
    N, Cin, H, W = x_nchw.shape
    Cout = params["w1"].shape[0]
    f32 = jnp.float32

    Hp = H + 2
    Wp = _round_up(W + 2, 8)          # padded row width, multiple of 8 (aligned kh taps)
    n_img = Hp * Wp                   # padded-domain rows per image (multiple of 8)
    pad = _round_up(Wp + 1, 8)        # halo >= max |tap offset|, multiple of 8
    n_ext = n_img + 2 * pad           # rows over which conv1's output is evaluated
    n_x = n_img + 4 * pad             # x rows incl. guard rows for conv1's taps
    cin_p = _round_up(Cin, 8)
    cmid = _round_up(Cout, 8)
    clane = _round_up(Cout, 128)      # lane-dense output channel dim

    # ---- input: NCHW -> NHWC, zero ring + right-pad W to Wp, pad channels,
    #      flatten rows per image, then add guard rows for the main pass.
    x_nhwc = jnp.transpose(x_nchw, (0, 2, 3, 1))
    x_nhwc = jnp.pad(x_nhwc, ((0, 0), (1, 1), (1, Wp - W - 1), (0, cin_p - Cin)))
    x_core = x_nhwc.reshape(N, n_img, cin_p)                          # (N, n_img, cin_p)
    x_rows = jnp.pad(x_core, ((0, 0), (2 * pad, 2 * pad), (0, 0)))    # (N, n_x, cin_p)

    # ---- weights: OIHW -> per-tap (Cin, Cout) blocks stacked along K ((kh,kw) row-major).
    w1_t = jnp.transpose(params["w1"], (2, 3, 1, 0)).reshape(9, Cin, Cout)
    w1_p = jnp.zeros((9, cin_p, cmid), f32).at[:, :Cin, :Cout].set(w1_t)
    w1_p = w1_p.reshape(9 * cin_p, cmid)

    w2_t = jnp.transpose(params["w2"], (2, 3, 1, 0)).reshape(9, Cout, Cout)
    w2_p = jnp.zeros((9, cmid, clane), f32).at[:, :Cout, :Cout].set(w2_t)
    w2_p = w2_p.reshape(9 * cmid, clane)

    wd_p = jnp.zeros((cin_p, clane), f32).at[:Cin, :Cout].set(
        jnp.transpose(params["wd"].reshape(Cout, Cin), (1, 0)))
    b1_p = jnp.zeros((1, cmid), f32).at[0, :Cout].set(params["b1"])
    b2_p = jnp.zeros((clane,), f32).at[:Cout].set(params["b2"])
    gamma_p = jnp.zeros((clane,), f32).at[:Cout].set(params["gamma"])
    beta_p = jnp.zeros((clane,), f32).at[:Cout].set(params["beta"])
    # NOTE: params["bd"] is intentionally dropped (cancelled by training-mode BN).

    cparams = pltpu.CompilerParams(
        dimension_semantics=("parallel",),            # images independent -> megacore
        vmem_limit_bytes=32 * 1024 * 1024)

    # ---- pass 1: per-image BN partial sums, combined by a tiny XLA reduction.
    sums, sqsums = pl.pallas_call(
        bn_stats_kernel,
        out_shape=(jax.ShapeDtypeStruct((N, 8, clane), f32),
                   jax.ShapeDtypeStruct((N, 8, clane), f32)),
        grid_spec=pltpu.PrefetchScalarGridSpec(
            num_scalar_prefetch=0,
            grid=(N,),
            in_specs=[
                pl.BlockSpec((None, n_img, cin_p), lambda n: (n, 0, 0)),
                pl.BlockSpec((cin_p, clane), lambda n: (0, 0)),
            ],
            out_specs=[
                pl.BlockSpec((None, 8, clane), lambda n: (n, 0, 0)),
                pl.BlockSpec((None, 8, clane), lambda n: (n, 0, 0)),
            ]),
        compiler_params=cparams,
        cost_estimate=pl.CostEstimate(
            flops=2 * N * n_img * cin_p * clane,
            transcendentals=0,
            bytes_accessed=4 * (N * n_img * cin_p + cin_p * clane + 2 * N * 8 * clane)),
    )(x_core, wd_p)

    cnt = float(N * H * W)
    s = jnp.sum(sums[:, 0, :], axis=0)
    ss = jnp.sum(sqsums[:, 0, :], axis=0)
    mean = s / cnt
    var = jnp.maximum(ss / cnt - mean * mean, 0.0)
    # TODO(synk): E[x^2]-mean^2 is cancellation-prone when |mean| >> std; switch to a
    # shifted / two-pass variance if that regime ever matters.
    scale = gamma_p * jax.lax.rsqrt(var + BN_EPS)                     # (clane,)
    shift = (beta_p + b2_p - mean * scale).reshape(1, clane)          # folds conv2 bias
    w2e = jnp.concatenate([w2_p, wd_p * scale[None, :]], axis=0)      # (9*cmid+cin_p, clane)

    # ---- pass 2: main fused kernel, gridded per image.
    kernel = functools.partial(residual_block_kernel,
                               H=H, W=W, Wp=Wp, pad=pad, n_img=n_img, n_ext=n_ext)
    flops = N * (2 * n_ext * 9 * cin_p * cmid
                 + 2 * n_img * (9 * cmid + cin_p) * clane)
    bytes_accessed = 4 * (N * n_x * cin_p + w1_p.size + w2e.size + b1_p.size
                          + shift.size + N * n_img * clane)

    out_rows = pl.pallas_call(
        kernel,
        out_shape=jax.ShapeDtypeStruct((N, n_img, clane), f32),
        grid_spec=pltpu.PrefetchScalarGridSpec(
            num_scalar_prefetch=0,
            grid=(N,),
            in_specs=[
                pl.BlockSpec((None, n_x, cin_p), lambda n: (n, 0, 0)),
                pl.BlockSpec(w1_p.shape, lambda n: (0, 0)),
                pl.BlockSpec(b1_p.shape, lambda n: (0, 0)),
                pl.BlockSpec(w2e.shape, lambda n: (0, 0)),
                pl.BlockSpec(shift.shape, lambda n: (0, 0)),
            ],
            out_specs=pl.BlockSpec((None, n_img, clane), lambda n: (n, 0, 0))),
        compiler_params=cparams,
        cost_estimate=pl.CostEstimate(
            flops=flops, transcendentals=0, bytes_accessed=bytes_accessed),
    )(x_rows, w1_p, b1_p, w2e, shift)

    # Extract the interior, drop channel padding, back to NCHW.
    out = out_rows.reshape(N, Hp, Wp, clane)[:, 1:H + 1, 1:W + 1, :Cout]
    return jnp.transpose(out, (0, 3, 1, 2))


def reference_forward(x, p):
    """Pure-JAX (XLA) reference replicating the PyTorch forward."""
    def conv(x, w, b, pad):
        y = jax.lax.conv_general_dilated(
            x, w, window_strides=(1, 1), padding=[(pad, pad), (pad, pad)],
            dimension_numbers=("NCHW", "OIHW", "NCHW"))
        return y + b[None, :, None, None]

    out = conv(x, p["w1"], p["b1"], 1)
    out = jnp.where(out >= 0, out, NEG_SLOPE * out)
    out = conv(out, p["w2"], p["b2"], 1)
    d = conv(x, p["wd"], p["bd"], 0)
    mean = d.mean(axis=(0, 2, 3), keepdims=True)
    var = ((d - mean) ** 2).mean(axis=(0, 2, 3), keepdims=True)
    ident = ((d - mean) / jnp.sqrt(var + BN_EPS)
             * p["gamma"][None, :, None, None] + p["beta"][None, :, None, None])
    out = out + ident
    return jnp.where(out >= 0, out, NEG_SLOPE * out)


def init_params(key, in_channels, out_channels):
    ks = jax.random.split(key, 8)
    return {
        "w1": 0.2 * jax.random.normal(ks[0], (out_channels, in_channels, 3, 3), jnp.float32),
        "b1": 0.1 * jax.random.normal(ks[1], (out_channels,), jnp.float32),
        "w2": 0.2 * jax.random.normal(ks[2], (out_channels, out_channels, 3, 3), jnp.float32),
        "b2": 0.1 * jax.random.normal(ks[3], (out_channels,), jnp.float32),
        "wd": 0.2 * jax.random.normal(ks[4], (out_channels, in_channels, 1, 1), jnp.float32),
        "bd": 0.1 * jax.random.normal(ks[5], (out_channels,), jnp.float32),
        "gamma": 1.0 + 0.1 * jax.random.normal(ks[6], (out_channels,), jnp.float32),
        "beta": 0.1 * jax.random.normal(ks[7], (out_channels,), jnp.float32),
    }


if __name__ == "__main__":
    key = jax.random.PRNGKey(0)
    k_x, k_p = jax.random.split(key)

    N, Cin, Cout, H, W = 2, 4, 8, 16, 16
    x = jax.random.normal(k_x, (N, Cin, H, W), jnp.float32)
    params = init_params(k_p, Cin, Cout)

    out = jax.block_until_ready(residual_block_forward(x, params, stride=1))
    ref = jax.block_until_ready(reference_forward(x, params))

    assert out.shape == (N, Cout, H, W)
    err = float(jnp.max(jnp.abs(out - ref)))
    assert err < 1e-3, f"max abs err = {err}"

    print("KERNEL_OK")
</pallas_src>

<mosaic_0001>
module attributes {stable_mosaic.version = 11 : i64} {
  func.func @bn_stats_kernel(%arg0: i32, %arg1: memref<1x432x8xf32, #tpu.memory_space<vmem>>, %arg2: memref<8x128xf32, #tpu.memory_space<vmem>>, %arg3: memref<1x8x128xf32, #tpu.memory_space<vmem>>, %arg4: memref<1x8x128xf32, #tpu.memory_space<vmem>>) attributes {dimension_semantics = [#tpu.dimension_semantics<parallel>], iteration_bounds = array<i64: 2>, scalar_prefetch = 0 : i64, scratch_operands = 0 : i64, tpu.core_type = #tpu.core_type<tc>, window_params = [{transform_indices = @transform_0, window_bounds = array<i64: 1, 432, 8>}, {pipeline_mode = #tpu.pipeline_mode<synchronous>, transform_indices = @transform_1, window_bounds = array<i64: 8, 128>}, {transform_indices = @transform_2, window_bounds = array<i64: 1, 8, 128>}, {transform_indices = @transform_3, window_bounds = array<i64: 1, 8, 128>}]} {
    %c0 = arith.constant 0 : index
    %c0_0 = arith.constant 0 : index
    %c0_1 = arith.constant 0 : index
    %0 = vector.load %arg1[%c0, %c0_0, %c0_1] : memref<1x432x8xf32, #tpu.memory_space<vmem>>, vector<1x432x8xf32>
    %1 = vector.shape_cast %0 : vector<1x432x8xf32> to vector<432x8xf32>
    %c0_2 = arith.constant 0 : index
    %c0_3 = arith.constant 0 : index
    %2 = vector.load %arg2[%c0_2, %c0_3] : memref<8x128xf32, #tpu.memory_space<vmem>>, vector<8x128xf32>
    %cst = arith.constant dense<0.000000e+00> : vector<432x128xf32>
    %3 = tpu.matmul %1, %2, %cst {dimension_numbers = #tpu.dot_dimension_numbers<[1], [0], [0], [1], [0, 0, 1, 1], [], []>} : vector<432x8xf32>, vector<8x128xf32>, vector<432x128xf32> -> vector<432x128xf32>
    %cst_4 = arith.constant dense<0.000000e+00> : vector<128xf32>
    %4 = vector.multi_reduction <add>, %3, %cst_4 [0] : vector<432x128xf32> to vector<128xf32>
    %5 = vector.shape_cast %4 : vector<128xf32> to vector<1x128xf32>
    %6 = arith.mulf %3, %3 : vector<432x128xf32>
    %cst_5 = arith.constant dense<0.000000e+00> : vector<128xf32>
    %7 = vector.multi_reduction <add>, %6, %cst_5 [0] : vector<432x128xf32> to vector<128xf32>
    %8 = vector.shape_cast %7 : vector<128xf32> to vector<1x128xf32>
    %9 = vector.shape_cast %5 : vector<1x128xf32> to vector<1x128xf32>
    %10 = vector.broadcast %9 : vector<1x128xf32> to vector<8x128xf32>
    %c0_6 = arith.constant 0 : index
    %c0_7 = arith.constant 0 : index
    %c0_8 = arith.constant 0 : index
    %11 = vector.load %arg3[%c0_6, %c0_7, %c0_8] : memref<1x8x128xf32, #tpu.memory_space<vmem>>, vector<1x8x128xf32>
    %12 = vector.shape_cast %11 : vector<1x8x128xf32> to vector<8x128xf32>
    %13 = vector.shape_cast %10 : vector<8x128xf32> to vector<1x8x128xf32>
    tpu.vector_store %arg3[%c0_6, %c0_7, %c0_8], %13 {strides = array<i32>} : memref<1x8x128xf32, #tpu.memory_space<vmem>>, vector<1x8x128xf32>,
    %14 = vector.shape_cast %8 : vector<1x128xf32> to vector<1x128xf32>
    %15 = vector.broadcast %14 : vector<1x128xf32> to vector<8x128xf32>
    %c0_9 = arith.constant 0 : index
    %c0_10 = arith.constant 0 : index
    %c0_11 = arith.constant 0 : index
    %16 = vector.load %arg4[%c0_9, %c0_10, %c0_11] : memref<1x8x128xf32, #tpu.memory_space<vmem>>, vector<1x8x128xf32>
    %17 = vector.shape_cast %16 : vector<1x8x128xf32> to vector<8x128xf32>
    %18 = vector.shape_cast %15 : vector<8x128xf32> to vector<1x8x128xf32>
    tpu.vector_store %arg4[%c0_9, %c0_10, %c0_11], %18 {strides = array<i32>} : memref<1x8x128xf32, #tpu.memory_space<vmem>>, vector<1x8x128xf32>,
    return
  }
  func.func @transform_0(%arg0: i32) -> (i32, i32, i32) {
    %c0_i32 = arith.constant 0 : i32
    %c0_i32_0 = arith.constant 0 : i32
    %c0_i32_1 = arith.constant 0 : i32
    return %arg0, %c0_i32, %c0_i32_0 : i32, i32, i32
  }
  func.func @transform_1(%arg0: i32) -> (i32, i32) {
    %c0_i32 = arith.constant 0 : i32
    %c0_i32_0 = arith.constant 0 : i32
    %c0_i32_1 = arith.constant 0 : i32
    return %c0_i32, %c0_i32_0 : i32, i32
  }
  func.func @transform_2(%arg0: i32) -> (i32, i32, i32) {
    %c0_i32 = arith.constant 0 : i32
    %c0_i32_0 = arith.constant 0 : i32
    %c0_i32_1 = arith.constant 0 : i32
    return %arg0, %c0_i32, %c0_i32_0 : i32, i32, i32
  }
  func.func @transform_3(%arg0: i32) -> (i32, i32, i32) {
    %c0_i32 = arith.constant 0 : i32
    %c0_i32_0 = arith.constant 0 : i32
    %c0_i32_1 = arith.constant 0 : i32
    return %arg0, %c0_i32, %c0_i32_0 : i32, i32, i32
  }
}

</mosaic_0001>

<bundles_post_ra>
// kernel: tpu_custom_call.1
= control target key start
LH: loop header
LB: loop body
LE: loop exit
PB: predicated region body
PF: predicated region fallthrough
CT: control target
= control target key end

     0   :  { %9 = vsyncpa [#allocation3], 0  ;;  %s1699_s0 = inlined_call_operand.vmem [shape: f32[2,432,8], index: 0, kind: input, shape index: {}]   ;;  %s1700_s1 = inlined_call_operand.vmem [shape: f32[8,128], index: 1, kind: input, shape index: {}]   ;;  %s1701_s2 = inlined_call_operand.hbm [shape: f32[2,8,128], index: 2, kind: output, shape index: {0}]   ;;  %s1702_s3 = inlined_call_operand.hbm [shape: f32[2,8,128], index: 3, kind: output, shape index: {1}]  }
   0x1   :  { %11 = vsyncpa [#allocation3 + $0x1], 0 }
   0x2   :  { %12 = vsyncpa [#allocation5], 0 }
   0x3   :  { %14 = vsyncpa [#allocation5 + $0x1], 0  ;;  %s1396_s12 = smov 0   ;;  %s1398_s13 = smov 0  }
   0x4   :  { %s1400_s14 = smov 0   ;;  %s1402_s15 = smov 0  }
   0x5 LB: > { %s1417_s16 = sadd.s32 4294967295, %s1372_s15   ;;  %s1030_s17 = sadd.s32 4294967294, %s1372_s15   ;;  %s1372_s15 = sphi %s1402_s15, %s1708_s15   ;;  %s1368_s14 = sphi %s1400_s14, %s1707_s14   ;;  %s1364_s13 = sphi %s1398_s13, %s1706_s13   ;;  %s1360_s12 = sphi %s1396_s12, %s1705_s12  }
   0x6   : > { %s1421_s18 = sadd.s32 1, %s1372_s15   ;;  %s74_s19 = sadd.s32 1, %s1368_s14 }
   0x7   : > { %s71_s20 = ssub.s32 %s1372_s15, %s1421_s18  ;;  %p84_p0 = scmp.ne.s32.totalorder %s1368_s14, %s1364_s13 }
   0x8   : > { %p72_p1 = scmp.eq.s32.totalorder %s71_s20, 0  ;;  %p85_p2 = scmp.eq.s32.totalorder %s1417_s16, 1 }
   0x9   : > { %p90_p3 = scmp.ne.s32.totalorder %s1364_s13, %s1360_s12  ;;  %p91_p4 = scmp.eq.s32.totalorder %s1030_s17, 1 }
   0xa   : > { %s1432_s21 = scalar_select %p72_p1, %s1368_s14, %s74_s19  }
   0xb   : > { %p1434_p5 = por %p85_p2, %p84_p0  ;;  %p1438_p6 = por %p91_p4, %p90_p3 }
   0xc   : > { %p1033_p7 = scmp.ge.s32.totalorder %s1372_s15, 1  ;;  %p146_p8 = scmp.lt.s32.totalorder %s1372_s15, 3 }
   0xe   : > { %p147_p9 = pnand %p1033_p7, %p146_p8 }
   0xf   : > { %p175_p10 = scmp.lt.s32.totalorder (!%p147_p9), %s1417_s16, 1  ;;  %s1618_s4 = sand.u32 (!%p147_p9), 1, %s1364_s13  }
  0x10   : > { %150 = sbr.rel (%p147_p9) target bundleno = 378 (0x17a), region = 28  ;;  %s1034_s5 = sshll.u32 (!%p147_p9), %s1618_s4, 3 }
  0x11   : > { %s1093_s6 = sshll.u32 (!%p147_p9), %s1417_s16, 7  ;;  %s167_s7 = scalar_lea.vmem (!%p147_p9), [#allocation2], %s1034_s5 }
  0x12   : > { %s926_s8 = sshll.u32 (!%p147_p9), %s167_s7, 4  ;;  %s1622_s9 = scalar_lea.vmem (!%p147_p9), [#allocation4], %s1034_s5  ;;  %s1630_s8 = int_to_ptr.vmem [resolvable:$true] %s926_s8 }
  0x13   : > { %s939_s10 = sshll.u32 (!%p147_p9), %s1622_s9, 4  ;;  %s1628_s19 = scalar_lea.hbm (!%p147_p9), %s1701_s2, %s1093_s6  ;;  %s1637_s10 = int_to_ptr.vmem [resolvable:$true] %s939_s10 }
  0x14   : > { %s1635_s24 = scalar_lea.hbm (!%p147_p9), %s1702_s3, %s1093_s6  ;;  %s908_s25 = scalar_lea.sflag (!%p147_p9), [#allocation3], %s1618_s4 }
  0x15   : > { %v234_v0 = vld [vmem:[%s1700_s1] sm:$0xff]  ;;  %s176_s26 = scalar_select %p175_p10, %s1417_s16, 1  ;;  %vm235_vm0 = vcmask 64512  }
  0x16   : > { %1152 = vmatprep.subr.mxu0 %v234_v0  ;;  %1235 = vmatprep.subr.mxu1 %v234_v0 }
  0x17   : > { %1153 = vmatpush3.msra.mxu0 %v234_v0  ;;  %1236 = vmatpush3.msra.mxu1 %v234_v0  ;;  %s1237_s27 = smul.u32 432, %s176_s26  ;;  %s1282_s26 = scalar_lea.vmem %s1630_s8, 128 }
  0x18   : > { %p1283_p11 = scmp.ne.s32.totalorder %s1630_s8, %s1282_s26 }
  0x19   : > { %s1452_s30 = scalar_lea.vmem %s1699_s0, %s1237_s27  ;;  %s1374_s27 = smov [#allocation2]  }
  0x1a   : > { %v180_v1 = vld [vmem:[%s1452_s30] sm:$0xff]  ;;  %v181_v2 = vld [vmem:[%s1452_s30 + $0x8] sm:$0xff]  ;;  %v182_v3 = vld [vmem:[%s1452_s30 + $0x10] sm:$0xff]  ;;  %p1284_p12 = pnand %p1283_p11, %p1434_p5  ;;  %s1286_s28 = sshll.u32 %s1374_s27, 4  ;;  %s1287_s28 = int_to_ptr.vmem [resolvable:$false] %s1286_s28 }
  0x1b   : > { %1154 = vmatprep.mubr.msk.f32.mxu0 %vm235_vm0, %v180_v1  ;;  %v183_v4 = vld [vmem:[%s1452_s30 + $0x18] sm:$0xff]  ;;  %v184_v5 = vld [vmem:[%s1452_s30 + $0x20] sm:$0xff]  ;;  %v185_v6 = vld [vmem:[%s1452_s30 + $0x28] sm:$0xff]  ;;  %s1288_s29 = scalar_lea.vmem %s1287_s28, 256  ;;  %p1289_p0 = scmp.lt.s32.totalorder %s1630_s8, %s1287_s28 }
  0x1c   : > { %1155 = vmatmul.mubr.msk.f32.vlgmr.msra.gmra.mxu0 %vm235_vm0, %v181_v2  ;;  %v186_v7 = vld [vmem:[%s1452_s30 + $0x30] sm:$0xff]  ;;  %v208_v8 = vld [vmem:[%s1452_s30 + $0xe0] sm:$0xff]  ;;  %v209_v9 = vld [vmem:[%s1452_s30 + $0xe8] sm:$0xff]  ;;  %p1285_p13 = pneg %p1284_p12  ;;  %p1290_p1 = scmp.lt.s32.totalorder %s1288_s29, %s1282_s26 }
  0x1d   : > { %1157 = vmatprep.mubr.msk.f32.mxu0 %vm235_vm0, %v182_v3  ;;  %1196 = vmatprep.mubr.msk.f32.mxu1 %vm235_vm0, %v208_v8  ;;  %v210_v10 = vld [vmem:[%s1452_s30 + $0xf0] sm:$0xff]  ;;  %v187_v11 = vld [vmem:[%s1452_s30 + $0x38] sm:$0xff]  ;;  %v188_v12 = vld [vmem:[%s1452_s30 + $0x40] sm:$0xff] }
  0x1e   : > { %1197 = vmatmul.mubr.msk.f32.vlgmr.msra.gmra.mxu1 %vm235_vm0, %v209_v9  ;;  %v211_v13 = vld [vmem:[%s1452_s30 + $0xf8] sm:$0xff]  ;;  %v212_v14 = vld [vmem:[%s1452_s30 + $0x100] sm:$0xff]  ;;  %v189_v15 = vld [vmem:[%s1452_s30 + $0x48] sm:$0xff]  ;;  %p1291_p2 = por %p1290_p1, %p1289_p0 }
  0x1f   : > { %1199 = vmatprep.mubr.msk.f32.mxu1 %vm235_vm0, %v210_v10  ;;  %v190_v16 = vld [vmem:[%s1452_s30 + $0x50] sm:$0xff]  ;;  %v213_v17 = vld [vmem:[%s1452_s30 + $0x108] sm:$0xff]  ;;  %v191_v19 = vld [vmem:[%s1452_s30 + $0x58] sm:$0xff] }
  0x20   : > { %1158 = vmatmul.mubr.msk.f32.gmra.mxu0 %vm235_vm0, %v183_v4  ;;  %v214_v18 = vld [vmem:[%s1452_s30 + $0x110] sm:$0xff]  ;;  %v192_v20 = vld [vmem:[%s1452_s30 + $0x60] sm:$0xff]  ;;  %v215_v21 = vld [vmem:[%s1452_s30 + $0x118] sm:$0xff]  ;;  %p1292_p3 = pnand %p1291_p2, %p1285_p13 }
  0x21   : > { %1160 = vmatprep.mubr.msk.f32.mxu0 %vm235_vm0, %v184_v5  ;;  %v216_v22 = vld [vmem:[%s1452_s30 + $0x120] sm:$0xff]  ;;  %v193_v23 = vld [vmem:[%s1452_s30 + $0x68] sm:$0xff]  ;;  %v194_v24 = vld [vmem:[%s1452_s30 + $0x70] sm:$0xff] }
  0x22   : > { %1200 = vmatmul.mubr.msk.f32.gmra.mxu1 %vm235_vm0, %v211_v13  ;;  %v217_v25 = vld [vmem:[%s1452_s30 + $0x128] sm:$0xff]  ;;  %v218_v26 = vld [vmem:[%s1452_s30 + $0x130] sm:$0xff]  ;;  %v195_v27 = vld [vmem:[%s1452_s30 + $0x78] sm:$0xff] }
  0x23   : > { %1202 = vmatprep.mubr.msk.f32.mxu1 %vm235_vm0, %v212_v14  ;;  %v196_v28 = vld [vmem:[%s1452_s30 + $0x80] sm:$0xff]  ;;  %v219_v29 = vld [vmem:[%s1452_s30 + $0x138] sm:$0xff]  ;;  %v197_v31 = vld [vmem:[%s1452_s30 + $0x88] sm:$0xff] }
  0x24   : > { %1161 = vmatmul.mubr.msk.f32.gmra.mxu0 %vm235_vm0, %v185_v6  ;;  %v220_v30 = vld [vmem:[%s1452_s30 + $0x140] sm:$0xff]  ;;  %v198_v32 = vld [vmem:[%s1452_s30 + $0x90] sm:$0xff]  ;;  %v221_v33 = vld [vmem:[%s1452_s30 + $0x148] sm:$0xff] }
  0x25   : > { %1163 = vmatprep.mubr.msk.f32.mxu0 %vm235_vm0, %v186_v7  ;;  %v222_v34 = vld [vmem:[%s1452_s30 + $0x150] sm:$0xff]  ;;  %v199_v35 = vld [vmem:[%s1452_s30 + $0x98] sm:$0xff]  ;;  %v200_v36 = vld [vmem:[%s1452_s30 + $0xa0] sm:$0xff] }
  0x26   : > { %1203 = vmatmul.mubr.msk.f32.gmra.mxu1 %vm235_vm0, %v213_v17  ;;  %v223_v37 = vld [vmem:[%s1452_s30 + $0x158] sm:$0xff]  ;;  %v224_v38 = vld [vmem:[%s1452_s30 + $0x160] sm:$0xff]  ;;  %v201_v39 = vld [vmem:[%s1452_s30 + $0xa8] sm:$0xff] }
  0x27   : > { %1205 = vmatprep.mubr.msk.f32.mxu1 %vm235_vm0, %v214_v18  ;;  %v202_v40 = vld [vmem:[%s1452_s30 + $0xb0] sm:$0xff]  ;;  %v225_v41 = vld [vmem:[%s1452_s30 + $0x168] sm:$0xff]  ;;  %v203_v43 = vld [vmem:[%s1452_s30 + $0xb8] sm:$0xff] }
  0x28   : > { %1164 = vmatmul.mubr.msk.f32.gmra.mxu0 %vm235_vm0, %v187_v11  ;;  %v226_v42 = vld [vmem:[%s1452_s30 + $0x170] sm:$0xff]  ;;  %v204_v44 = vld [vmem:[%s1452_s30 + $0xc0] sm:$0xff]  ;;  %v227_v45 = vld [vmem:[%s1452_s30 + $0x178] sm:$0xff] }
  0x29   : > { %1166 = vmatprep.mubr.msk.f32.mxu0 %vm235_vm0, %v188_v12  ;;  %v228_v46 = vld [vmem:[%s1452_s30 + $0x180] sm:$0xff]  ;;  %v205_v47 = vld [vmem:[%s1452_s30 + $0xc8] sm:$0xff]  ;;  %v206_v48 = vld [vmem:[%s1452_s30 + $0xd0] sm:$0xff] }
  0x2a   : > { %1206 = vmatmul.mubr.msk.f32.gmra.mxu1 %vm235_vm0, %v215_v21  ;;  %v229_v49 = vld [vmem:[%s1452_s30 + $0x188] sm:$0xff]  ;;  %v230_v50 = vld [vmem:[%s1452_s30 + $0x190] sm:$0xff]  ;;  %v207_v51 = vld [vmem:[%s1452_s30 + $0xd8] sm:$0xff] }
  0x2b   : > { %1208 = vmatprep.mubr.msk.f32.mxu1 %vm235_vm0, %v216_v22  ;;  %v231_v52 = vld [vmem:[%s1452_s30 + $0x198] sm:$0xff]  ;;  %v232_v53 = vld [vmem:[%s1452_s30 + $0x1a0] sm:$0xff]  ;;  %v233_v54 = vld [vmem:[%s1452_s30 + $0x1a8] sm:$0xff] }
  0x2c   : > { %1167 = vmatmul.mubr.msk.f32.gmra.mxu0 %vm235_vm0, %v189_v15 }
  0x2d   : > { %1169 = vmatprep.mubr.msk.f32.mxu0 %vm235_vm0, %v190_v16 }
  0x2e   : > { %1209 = vmatmul.mubr.msk.f32.gmra.mxu1 %vm235_vm0, %v217_v25 }
  0x2f   : > { %1211 = vmatprep.mubr.msk.f32.mxu1 %vm235_vm0, %v218_v26 }
  0x30   : > { %1170 = vmatmul.mubr.msk.f32.gmra.mxu0 %vm235_vm0, %v191_v19 }
  0x31   : > { %1172 = vmatprep.mubr.msk.f32.mxu0 %vm235_vm0, %v192_v20 }
  0x32   : > { %1212 = vmatmul.mubr.msk.f32.gmra.mxu1 %vm235_vm0, %v219_v29 }
  0x33   : > { %1214 = vmatprep.mubr.msk.f32.mxu1 %vm235_vm0, %v220_v30 }
  0x34   : > { %1173 = vmatmul.mubr.msk.f32.gmra.mxu0 %vm235_vm0, %v193_v23 }
  0x35   : > { %1175 = vmatprep.mubr.msk.f32.mxu0 %vm235_vm0, %v194_v24 }
  0x36   : > { %1215 = vmatmul.mubr.msk.f32.gmra.mxu1 %vm235_vm0, %v221_v33 }
  0x37   : > { %1217 = vmatprep.mubr.msk.f32.mxu1 %vm235_vm0, %v222_v34 }
  0x38   : > { %1176 = vmatmul.mubr.msk.f32.gmra.mxu0 %vm235_vm0, %v195_v27 }
  0x39   : > { %1178 = vmatprep.mubr.msk.f32.mxu0 %vm235_vm0, %v196_v28 }
  0x3a   : > { %1218 = vmatmul.mubr.msk.f32.gmra.mxu1 %vm235_vm0, %v223_v37 }
  0x3b   : > { %1220 = vmatprep.mubr.msk.f32.mxu1 %vm235_vm0, %v224_v38 }
  0x3c   : > { %1179 = vmatmul.mubr.msk.f32.gmra.mxu0 %vm235_vm0, %v197_v31 }
  0x3d   : > { %1181 = vmatprep.mubr.msk.f32.mxu0 %vm235_vm0, %v198_v32 }
  0x3e   : > { %1221 = vmatmul.mubr.msk.f32.gmra.mxu1 %vm235_vm0, %v225_v41 }
  0x3f   : > { %1223 = vmatprep.mubr.msk.f32.mxu1 %vm235_vm0, %v226_v42 }
  0x40   : > { %1182 = vmatmul.mubr.msk.f32.gmra.mxu0 %vm235_vm0, %v199_v35 }
  0x41   : > { %1184 = vmatprep.mubr.msk.f32.mxu0 %vm235_vm0, %v200_v36 }
  0x42   : > { %1224 = vmatmul.mubr.msk.f32.gmra.mxu1 %vm235_vm0, %v227_v45 }
  0x43   : > { %1226 = vmatprep.mubr.msk.f32.mxu1 %vm235_vm0, %v228_v46 }
  0x44   : > { %1185 = vmatmul.mubr.msk.f32.gmra.mxu0 %vm235_vm0, %v201_v39 }
  0x45   : > { %1187 = vmatprep.mubr.msk.f32.mxu0 %vm235_vm0, %v202_v40 }
  0x46   : > { %1227 = vmatmul.mubr.msk.f32.gmra.mxu1 %vm235_vm0, %v229_v49 }
  0x47   : > { %1229 = vmatprep.mubr.msk.f32.mxu1 %vm235_vm0, %v230_v50 }
  0x48   : > { %1188 = vmatmul.mubr.msk.f32.gmra.mxu0 %vm235_vm0, %v203_v43 }
  0x49   : > { %1190 = vmatprep.mubr.msk.f32.mxu0 %vm235_vm0, %v204_v44 }
  0x4a   : > { %1230 = vmatmul.mubr.msk.f32.gmra.mxu1 %vm235_vm0, %v231_v52 }
  0x4b   : > { %1232 = vmatprep.mubr.msk.f32.mxu1 %vm235_vm0, %v232_v53 }
  0x4c   : > { %1191 = vmatmul.mubr.msk.f32.gmra.mxu0 %vm235_vm0, %v205_v47 }
  0x4d   : > { %1193 = vmatprep.mubr.msk.f32.mxu0 %vm235_vm0, %v206_v48 }
  0x4e   : > { %1233 = vmatmul.mubr.msk.f32.gmra.mxu1 %vm235_vm0, %v233_v54 }
  0x50   : > { %1194 = vmatmul.mubr.msk.f32.gmra.mxu0 %vm235_vm0, %v207_v51 }
  0xdc   : > { %v1156_v55 = vpop.f32.mrf.mxu0 }
  0xdd   : > { %v793_v59 = vmul.f32 %v1156_v55, %v1156_v55 }
  0xde   : > { %v464_v56 = vpop.f32.mrf.mxu0  ;;  %v1562_v5 = vpop.f32.mrf.mxu1 }
  0xdf   : > { %v792_v57 = vmul.f32 %v464_v56, %v464_v56  ;;  %v733_v60 = vadd.f32 %v1156_v55, %v464_v56 }
  0xe0   : > { %v1159_v58 = vpop.f32.mrf.mxu0  ;;  %v1564_v10 = vpop.f32.mrf.mxu1 }
  0xe1   : > { %v846_v62 = vadd.f32 %v793_v59, %v792_v57  ;;  %v795_v2 = vmul.f32 %v1159_v58, %v1159_v58 }
  0xe2   : > { %v474_v61 = vpop.f32.mrf.mxu0  ;;  %v1566_v15 = vpop.f32.mrf.mxu1 }
  0xe3   : > { %v734_v63 = vadd.f32 %v733_v60, %v474_v61  ;;  %v794_v0 = vmul.f32 %v474_v61, %v474_v61 }
  0xe4   : > { %v1162_v1 = vpop.f32.mrf.mxu0  ;;  %v1568_v21 = vpop.f32.mrf.mxu1 }
  0xe5   : > { %v847_v3 = vadd.f32 %v846_v62, %v794_v0  ;;  %v735_v4 = vadd.f32 %v1159_v58, %v734_v63  ;;  %v797_v12 = vmul.f32 %v1162_v1, %v1162_v1 }
  0xe6   : > { %v484_v6 = vpop.f32.mrf.mxu0  ;;  %v1570_v30 = vpop.f32.mrf.mxu1 }
  0xe7   : > { %v736_v7 = vadd.f32 %v735_v4, %v484_v6  ;;  %v796_v8 = vmul.f32 %v484_v6, %v484_v6  ;;  %v848_v9 = vadd.f32 %v847_v3, %v795_v2 }
  0xe8   : > { %v1165_v11 = vpop.f32.mrf.mxu0  ;;  %v1572_v39 = vpop.f32.mrf.mxu1 }
  0xe9   : > { %v849_v13 = vadd.f32 %v848_v9, %v796_v8  ;;  %v737_v14 = vadd.f32 %v1162_v1, %v736_v7  ;;  %v799_v22 = vmul.f32 %v1165_v11, %v1165_v11 }
  0xea   : > { %v494_v16 = vpop.f32.mrf.mxu0  ;;  %v1574_v48 = vpop.f32.mrf.mxu1 }
  0xeb   : > { %v738_v17 = vadd.f32 %v737_v14, %v494_v16  ;;  %v798_v18 = vmul.f32 %v494_v16, %v494_v16  ;;  %v850_v19 = vadd.f32 %v849_v13, %v797_v12 }
  0xec   : > { %v1168_v20 = vpop.f32.mrf.mxu0  ;;  %v1576_v57 = vpop.f32.mrf.mxu1 }
  0xed   : > { %v851_v23 = vadd.f32 %v850_v19, %v798_v18  ;;  %v739_v24 = vadd.f32 %v1165_v11, %v738_v17  ;;  %v801_v31 = vmul.f32 %v1168_v20, %v1168_v20 }
  0xee   : > { %v504_v25 = vpop.f32.mrf.mxu0  ;;  %v1578_v2 = vpop.f32.mrf.mxu1 }
  0xef   : > { %v740_v26 = vadd.f32 %v739_v24, %v504_v25  ;;  %v800_v27 = vmul.f32 %v504_v25, %v504_v25  ;;  %v852_v28 = vadd.f32 %v851_v23, %v799_v22 }
  0xf0   : > { %v1171_v29 = vpop.f32.mrf.mxu0  ;;  %v1580_v13 = vpop.f32.mrf.mxu1 }
  0xf1   : > { %v853_v32 = vadd.f32 %v852_v28, %v800_v27  ;;  %v741_v33 = vadd.f32 %v1168_v20, %v740_v26  ;;  %v803_v40 = vmul.f32 %v1171_v29, %v1171_v29 }
  0xf2   : > { %v514_v34 = vpop.f32.mrf.mxu0  ;;  %v1582_v24 = vpop.f32.mrf.mxu1 }
  0xf3   : > { %v742_v35 = vadd.f32 %v741_v33, %v514_v34  ;;  %v802_v36 = vmul.f32 %v514_v34, %v514_v34  ;;  %v854_v37 = vadd.f32 %v853_v32, %v801_v31 }
  0xf4   : > { %v1174_v38 = vpop.f32.mrf.mxu0  ;;  %v654_v34 = vpop.f32.mrf.mxu1 }
  0xf5   : > { %v855_v41 = vadd.f32 %v854_v37, %v802_v36  ;;  %v743_v42 = vadd.f32 %v1171_v29, %v742_v35  ;;  %v805_v49 = vmul.f32 %v1174_v38, %v1174_v38 }
  0xf6   : > { %v524_v43 = vpop.f32.mrf.mxu0 }
  0xf7   : > { %v744_v44 = vadd.f32 %v743_v42, %v524_v43  ;;  %v804_v45 = vmul.f32 %v524_v43, %v524_v43  ;;  %v856_v46 = vadd.f32 %v855_v41, %v803_v40 }
  0xf8   : > { %v1177_v47 = vpop.f32.mrf.mxu0 }
  0xf9   : > { %v857_v50 = vadd.f32 %v856_v46, %v804_v45  ;;  %v745_v51 = vadd.f32 %v1174_v38, %v744_v44  ;;  %v807_v58 = vmul.f32 %v1177_v47, %v1177_v47  ;;  %v1216_v44 = vpop.f32.mrf.mxu1 }
  0xfa   : > { %v534_v52 = vpop.f32.mrf.mxu0 }
  0xfb   : > { %v746_v53 = vadd.f32 %v745_v51, %v534_v52  ;;  %v806_v54 = vmul.f32 %v534_v52, %v534_v52  ;;  %v858_v55 = vadd.f32 %v857_v50, %v805_v49 }
  0xfc   : > { %v1180_v56 = vpop.f32.mrf.mxu0 }
  0xfd   : > { %v859_v59 = vadd.f32 %v858_v55, %v806_v54  ;;  %v747_v60 = vadd.f32 %v1177_v47, %v746_v53  ;;  %v809_v3 = vmul.f32 %v1180_v56, %v1180_v56  ;;  %v664_v53 = vpop.f32.mrf.mxu1 }
  0xfe   : > { %v544_v61 = vpop.f32.mrf.mxu0 }
  0xff   : > { %v748_v62 = vadd.f32 %v747_v60, %v544_v61  ;;  %v808_v63 = vmul.f32 %v544_v61, %v544_v61  ;;  %v860_v0 = vadd.f32 %v859_v59, %v807_v58  ;;  %v820_v60 = vmul.f32 %v1564_v10, %v1564_v10  ;;  %v1219_v61 = vpop.f32.mrf.mxu1 }
 0x100   : > { %v1183_v1 = vpop.f32.mrf.mxu0 }
 0x101   : > { %v861_v4 = vadd.f32 %v860_v0, %v808_v63  ;;  %v749_v6 = vadd.f32 %v1180_v56, %v748_v62  ;;  %v811_v14 = vmul.f32 %v1183_v1, %v1183_v1  ;;  %v821_v62 = vmul.f32 %v1562_v5, %v1562_v5 }
 0x102   : > { %v554_v7 = vpop.f32.mrf.mxu0 }
 0x103   : > { %v750_v8 = vadd.f32 %v749_v6, %v554_v7  ;;  %v810_v9 = vmul.f32 %v554_v7, %v554_v7  ;;  %v862_v11 = vadd.f32 %v861_v4, %v809_v3  ;;  %v822_v3 = vmul.f32 %v1568_v21, %v1568_v21  ;;  %v674_v6 = vpop.f32.mrf.mxu1 }
 0x104   : > { %v1186_v12 = vpop.f32.mrf.mxu0  ;;  %v823_v7 = vmul.f32 %v1566_v15, %v1566_v15 }
 0x105   : > { %v863_v16 = vadd.f32 %v862_v11, %v810_v9  ;;  %v751_v17 = vadd.f32 %v1183_v1, %v750_v8  ;;  %v813_v25 = vmul.f32 %v1186_v12, %v1186_v12  ;;  %v824_v11 = vmul.f32 %v1572_v39, %v1572_v39 }
 0x106   : > { %v564_v18 = vpop.f32.mrf.mxu0 }
 0x107   : > { %v752_v19 = vadd.f32 %v751_v17, %v564_v18  ;;  %v812_v20 = vmul.f32 %v564_v18, %v564_v18  ;;  %v864_v22 = vadd.f32 %v863_v16, %v811_v14  ;;  %v825_v14 = vmul.f32 %v1570_v30, %v1570_v30 }
 0x108   : > { %v1189_v23 = vpop.f32.mrf.mxu0  ;;  %v826_v18 = vmul.f32 %v1576_v57, %v1576_v57 }
 0x109   : > { %v865_v26 = vadd.f32 %v864_v22, %v812_v20  ;;  %v753_v27 = vadd.f32 %v1186_v12, %v752_v19  ;;  %v815_v35 = vmul.f32 %v1189_v23, %v1189_v23  ;;  %v827_v20 = vmul.f32 %v1574_v48, %v1574_v48 }
 0x10a   : > { %v574_v28 = vpop.f32.mrf.mxu0 }
 0x10b   : > { %v754_v29 = vadd.f32 %v753_v27, %v574_v28  ;;  %v814_v31 = vmul.f32 %v574_v28, %v574_v28  ;;  %v866_v32 = vadd.f32 %v865_v26, %v813_v25  ;;  %v828_v25 = vmul.f32 %v1580_v13, %v1580_v13 }
 0x10c   : > { %v1192_v33 = vpop.f32.mrf.mxu0  ;;  %v829_v27 = vmul.f32 %v1578_v2, %v1578_v2 }
 0x10d   : > { %v867_v36 = vadd.f32 %v866_v32, %v814_v31  ;;  %v755_v37 = vadd.f32 %v1189_v23, %v754_v29  ;;  %v817_v45 = vmul.f32 %v1192_v33, %v1192_v33  ;;  %v830_v31 = vmul.f32 %v654_v34, %v654_v34 }
 0x10e   : > { %v584_v38 = vpop.f32.mrf.mxu0 }
 0x10f   : > { %v756_v40 = vadd.f32 %v755_v37, %v584_v38  ;;  %v816_v41 = vmul.f32 %v584_v38, %v584_v38  ;;  %v868_v42 = vadd.f32 %v867_v36, %v815_v35 }
 0x110   : > { %v1195_v43 = vpop.f32.mrf.mxu0 }
 0x111   : > { %v869_v46 = vadd.f32 %v868_v42, %v816_v41  ;;  %v757_v47 = vadd.f32 %v1192_v33, %v756_v40  ;;  %v819_v54 = vmul.f32 %v1195_v43, %v1195_v43  ;;  %v833_v41 = vmul.f32 %v1216_v44, %v1216_v44 }
 0x112   : > { %v594_v49 = vpop.f32.mrf.mxu0 }
 0x113   : > { %v758_v50 = vadd.f32 %v757_v47, %v594_v49  ;;  %v818_v51 = vmul.f32 %v594_v49, %v594_v49  ;;  %v870_v52 = vadd.f32 %v869_v46, %v817_v45  ;;  %v834_v46 = vmul.f32 %v674_v6, %v674_v6 }
 0x115   : > { %v759_v55 = vadd.f32 %v1195_v43, %v758_v50  ;;  %v871_v56 = vadd.f32 %v870_v52, %v818_v51 }
 0x117   : > { %v872_v58 = vadd.f32 %v871_v56, %v819_v54  ;;  %v760_v59 = vadd.f32 %v759_v55, %v1564_v10 }
 0x119   : > { %v873_v63 = vadd.f32 %v872_v58, %v820_v60  ;;  %v761_v0 = vadd.f32 %v1562_v5, %v760_v59  ;;  %v1222_v5 = vpop.f32.mrf.mxu1 }
 0x11a   : > { %v837_v56 = vmul.f32 %v1222_v5, %v1222_v5 }
 0x11b   : > { %v762_v1 = vadd.f32 %v761_v0, %v1568_v21  ;;  %v874_v4 = vadd.f32 %v873_v63, %v821_v62 }
 0x11d   : > { %v875_v8 = vadd.f32 %v874_v4, %v822_v3  ;;  %v763_v10 = vadd.f32 %v1566_v15, %v762_v1  ;;  %v684_v15 = vpop.f32.mrf.mxu1 }
 0x11e   : > { %v836_v52 = vmul.f32 %v684_v15, %v684_v15 }
 0x11f   : > { %v764_v9 = vadd.f32 %v763_v10, %v1572_v39  ;;  %v876_v12 = vadd.f32 %v875_v8, %v823_v7 }
 0x121   : > { %v877_v16 = vadd.f32 %v876_v12, %v824_v11  ;;  %v765_v21 = vadd.f32 %v1570_v30, %v764_v9  ;;  %v1225_v30 = vpop.f32.mrf.mxu1 }
 0x122   : > { %v839_v63 = vmul.f32 %v1225_v30, %v1225_v30 }
 0x123   : > { %v766_v17 = vadd.f32 %v765_v21, %v1576_v57  ;;  %v878_v19 = vadd.f32 %v877_v16, %v825_v14  ;;  %v694_v33 = vpop.f32.mrf.mxu1 }
 0x124   : > { %v838_v59 = vmul.f32 %v694_v33, %v694_v33 }
 0x125   : > { %v879_v22 = vadd.f32 %v878_v19, %v826_v18  ;;  %v767_v39 = vadd.f32 %v1574_v48, %v766_v17  ;;  %v831_v48 = vmul.f32 %v1582_v24, %v1582_v24  ;;  %v1228_v40 = vpop.f32.mrf.mxu1 }
 0x126   : > { %v841_v7 = vmul.f32 %v1228_v40, %v1228_v40 }
 0x127   : > { %v768_v23 = vadd.f32 %v767_v39, %v1580_v13  ;;  %v880_v26 = vadd.f32 %v879_v22, %v827_v20  ;;  %v832_v13 = vmul.f32 %v664_v53, %v664_v53  ;;  %v704_v47 = vpop.f32.mrf.mxu1 }
 0x128   : > { %v840_v3 = vmul.f32 %v704_v47, %v704_v47 }
 0x129   : > { %v881_v28 = vadd.f32 %v880_v26, %v828_v25  ;;  %v769_v57 = vadd.f32 %v1578_v2, %v768_v23  ;;  %v1231_v55 = vpop.f32.mrf.mxu1 }
 0x12b   : > { %v770_v29 = vadd.f32 %v769_v57, %v654_v34  ;;  %v882_v32 = vadd.f32 %v881_v28, %v829_v27  ;;  %v835_v34 = vmul.f32 %v1219_v61, %v1219_v61  ;;  %v714_v62 = vpop.f32.mrf.mxu1 }
 0x12c   : > { %v842_v9 = vmul.f32 %v714_v62, %v714_v62 }
 0x12d   : > { %v883_v35 = vadd.f32 %v882_v32, %v830_v31  ;;  %v771_v36 = vadd.f32 %v1582_v24, %v770_v29 }
 0x12f   : > { %v772_v37 = vadd.f32 %v771_v36, %v664_v53  ;;  %v884_v38 = vadd.f32 %v883_v35, %v831_v48 }
 0x131   : > { %v885_v42 = vadd.f32 %v884_v38, %v832_v13  ;;  %v773_v43 = vadd.f32 %v1216_v44, %v772_v37 }
 0x133   : > { %v774_v45 = vadd.f32 %v773_v43, %v674_v6  ;;  %v886_v2 = vadd.f32 %v885_v42, %v833_v41  ;;  %v1234_v6 = vpop.f32.mrf.mxu1 }
 0x134   : > { %v845_v19 = vmul.f32 %v1234_v6, %v1234_v6 }
 0x135   : > { %v887_v49 = vadd.f32 %v886_v2, %v834_v46  ;;  %v775_v50 = vadd.f32 %v1219_v61, %v774_v45  ;;  %v724_v12 = vpop.f32.mrf.mxu1 }
 0x136   : > { %v844_v17 = vmul.f32 %v724_v12, %v724_v12 }
 0x137   : > { %v776_v51 = vadd.f32 %v775_v50, %v684_v15  ;;  %v888_v54 = vadd.f32 %v887_v49, %v835_v34 }
 0x139   : > { %v889_v24 = vadd.f32 %v888_v54, %v836_v52  ;;  %v777_v58 = vadd.f32 %v1222_v5, %v776_v51  ;;  %v843_v5 = vmul.f32 %v1231_v55, %v1231_v55 }
 0x13b   : > { %v778_v53 = vadd.f32 %v777_v58, %v694_v33  ;;  %v890_v60 = vadd.f32 %v889_v24, %v837_v56 }
 0x13d   : > { %v891_v44 = vadd.f32 %v890_v60, %v838_v59  ;;  %v779_v0 = vadd.f32 %v1225_v30, %v778_v53 }
 0x13f   : > { %v780_v1 = vadd.f32 %v779_v0, %v704_v47  ;;  %v892_v4 = vadd.f32 %v891_v44, %v839_v63 }
 0x141   : > { %v893_v61 = vadd.f32 %v892_v4, %v840_v3  ;;  %v781_v8 = vadd.f32 %v1228_v40, %v780_v1 }
 0x143   : > { %v782_v10 = vadd.f32 %v781_v8, %v714_v62  ;;  %v894_v11 = vadd.f32 %v893_v61, %v841_v7 }
 0x145   : > { %v895_v14 = vadd.f32 %v894_v11, %v842_v9  ;;  %v783_v16 = vadd.f32 %v1231_v55, %v782_v10 }
 0x147   : > { %v784_v21 = vadd.f32 %v783_v16, %v724_v12  ;;  %v896_v18 = vadd.f32 %v895_v14, %v843_v5 }
 0x149   : > { %v785_v15 = vadd.f32 %v1234_v6, %v784_v21  ;;  %v897_v20 = vadd.f32 %v896_v18, %v844_v17 }
 0x14b   : > { %v786_v22 = vrot.slane %v785_v15, 4  ;;  %v898_v39 = vadd.f32 %v897_v20, %v845_v19 }
 0x14d   : > { %v787_v23 = vadd.f32 %v786_v22, %v785_v15  ;;  %v899_v25 = vrot.slane %v898_v39, 4 }
 0x14f   : > { %v788_v26 = vrot.slane %v787_v23, 2  ;;  %v900_v30 = vadd.f32 %v899_v25, %v898_v39 }
 0x151   : > { %v789_v27 = vadd.f32 %v788_v26, %v787_v23  ;;  %v901_v28 = vrot.slane %v900_v30, 2 }
 0x153   : > { %v790_v57 = vrot.slane %v789_v27, 1  ;;  %v902_v29 = vadd.f32 %v901_v28, %v900_v30 }
 0x155   : > { %v791_v31 = vadd.f32 %v790_v57, %v789_v27  ;;  %v903_v32 = vrot.slane %v902_v29, 1 }
 0x157   : > { %905 = vst [vmem:[%s167_s7] sm:$0xff] %v791_v31  ;;  %v904_v33 = vadd.f32 %v903_v32, %v902_v29 }
 0x158   : > { %1295 = shalt.err (!%p1292_p3)
}
 0x159   : > { %s1296_s30 = scalar_lea.hbm %s1628_s19, 128  ;;  %s1300_s7 = scalar_lea.hbm %s1701_s2, 256 }
 0x15a   : > { %p1297_p4 = scmp.ne.s32.totalorder %s1628_s19, %s1296_s30  ;;  %p1301_p9 = scmp.lt.s32.totalorder %s1628_s19, %s1701_s2 }
 0x15b   : > { %p1302_p10 = scmp.lt.s32.totalorder %s1300_s7, %s1296_s30 }
 0x15c   : > { %p1298_p7 = pnand %p1297_p4, %p1434_p5 }
 0x15d   : > { %p1303_p11 = por %p1302_p10, %p1301_p9 }
 0x15e   : > { %p1299_p8 = pneg %p1298_p7 }
 0x160   : > { %p1304_p12 = pnand %p1303_p11, %p1299_p8 }
 0x162   : > { %1307 = shalt.err (!%p1304_p12)
}
 0x163   : > { %1238 = dma.vmem_to_hbm [thread:$0]  (%p1434_p5), %s1630_s8, 128, %s1628_s19, %s908_s25   ;;  %906 = vst [vmem:[%s1622_s9] sm:$0xff] %v904_v33 }
 0x164   : > { %s913_s16 = scalar_lea.sflag [#allocation5], %s1618_s4  ;;  %s1308_s20 = scalar_lea.vmem %s1637_s10, 128 }
 0x165   : > { %p1309_p13 = scmp.ne.s32.totalorder %s1637_s10, %s1308_s20  ;;  %s1375_s26 = smov [#allocation4]  }
 0x166   : > { %s1312_s27 = sshll.u32 %s1375_s26, 4  ;;  %s1313_s27 = int_to_ptr.vmem [resolvable:$false] %s1312_s27 }
 0x167   : > { %p1310_p0 = pnand %p1309_p13, %p1434_p5  ;;  %s1314_s28 = scalar_lea.vmem %s1313_s27, 256 }
 0x168   : > { %p1315_p2 = scmp.lt.s32.totalorder %s1637_s10, %s1313_s27  ;;  %p1316_p3 = scmp.lt.s32.totalorder %s1314_s28, %s1308_s20 }
 0x169   : > { %p1311_p1 = pneg %p1310_p0 }
 0x16a   : > { %p1317_p4 = por %p1316_p3, %p1315_p2 }
 0x16c   : > { %p1318_p7 = pnand %p1317_p4, %p1311_p1 }
 0x16e   : > { %1321 = shalt.err (!%p1318_p7)
}
 0x16f   : > { %s1322_s8 = scalar_lea.hbm %s1635_s24, 128  ;;  %s1326_s19 = scalar_lea.hbm %s1702_s3, 256 }
 0x170   : > { %p1323_p8 = scmp.ne.s32.totalorder %s1635_s24, %s1322_s8  ;;  %p1327_p11 = scmp.lt.s32.totalorder %s1635_s24, %s1702_s3 }
 0x171   : > { %p1328_p12 = scmp.lt.s32.totalorder %s1326_s19, %s1322_s8 }
 0x172   : > { %p1324_p9 = pnand %p1323_p8, %p1434_p5 }
 0x173   : > { %p1329_p13 = por %p1328_p12, %p1327_p11 }
 0x174   : > { %p1325_p10 = pneg %p1324_p9 }
 0x176   : > { %p1330_p0 = pnand %p1329_p13, %p1325_p10 }
 0x178   : > { %1333 = shalt.err (!%p1330_p0)
}
 0x179   : > { %1239 = dma.vmem_to_hbm [thread:$0]  (%p1434_p5), %s1637_s10, 128, %s1635_s24, %s913_s16  }
 0x17a PF: > { %p1249_p1 = scmp.ge.s32.totalorder %s1372_s15, 2  ;;  %s951_s30 = sand.u32 1, %s1360_s12  }
 0x17b   : > { %s952_s5 = scalar_lea.sflag [#allocation3], %s951_s30 }
 0x17c   : > { %p1243_p2 = pnand %p1249_p1, %p1438_p6 }
 0x17e   : > { %p1244_p3 = pneg %p1243_p2 }
 0x180   : > { %1351 = dma.done.wait (%p1244_p3), %s952_s5, 128  }
 0x181   : > { %1353 = vsyncadd (%p1244_p3), %s952_s5, 4294967168  ;;  %s961_s6 = scalar_lea.sflag [#allocation5], %s951_s30 }
 0x182   : > { %1355 = dma.done.wait (%p1244_p3), %s961_s6, 128  }
 0x183   : > { %1357 = vsyncadd (%p1244_p3), %s961_s6, 4294967168  ;;  %p17_p5 = scmp.ge.s32.totalorder %s1421_s18, 4   ;;  %s1705_s12 = smov %s1364_s13 }
 0x184   : > { %s1706_s13 = smov %s1368_s14  ;;  %s1707_s14 = smov %s1432_s21 }
 0x185   : > { %s1708_s15 = smov %s1421_s18  ;;  %19 = sbr.rel (!%p17_p5) target bundleno = 5 (0x5), region = 80 }
 0x18a   :  { %966 = vsyncpa [#allocation3], 1 }
 0x18b   :  { %968 = vsyncpa [#allocation3 + $0x1], 1 }
 0x18c   :  { %969 = vsyncpa [#allocation5], 1 }
 0x18d   :  { %971 = vsyncpa [#allocation5 + $0x1], 1 }

</bundles_post_ra>
